<compile_context>
chip_gen: v7x
topology: tpu7x:2x2x1
jax: 0.10.0
libtpu: 0.0.40
codegen_flags: <defaults>
</compile_context>

<pallas_src>
import functools

import numpy as np
import jax
import jax.numpy as jnp
from jax import lax
from jax.experimental import pallas as pl
from jax.experimental.pallas import tpu as pltpu


# ------------------------- canvas pre-pass (angle-invariant) -----------------------

def _canvas_kernel(sdf_ref, inty_ref, canvas_ref):
    """occ = clamp(50*(sigmoid(x)-0.5), 0, 1) == clamp(25*tanh(x/2), 0, 1);
       canvas = sum_c occ * inty   (bf16 out).

    sdf_ref    : VMEM (C, th, W) f32
    inty_ref   : VMEM (C, 1, 1)  f32
    canvas_ref : VMEM (th, W)    bf16
    """
    # single EUP push (tanh) instead of exp + reciprocal
    occ = jnp.clip(25.0 * jnp.tanh(0.5 * sdf_ref[...]), 0.0, 1.0)        # (C, th, W)
    canvas = jnp.sum(occ * inty_ref[...], axis=0)                        # (th, W) f32
    canvas_ref[...] = canvas.astype(jnp.bfloat16)


# ------------------------- per-angle-block warp + projection -----------------------

def _warp_project_kernel(trig_ref, canvas_t_ref, out_ref, *, ta, ty):
    """One grid step = TA projection angles.

    trig_ref     : SMEM (2, Tpad) f32, row 0 = cos(theta), row 1 = sin(theta)
    canvas_t_ref : VMEM (W, H)   bf16, TRANSPOSED intensity-weighted occupancy canvas
    out_ref      : VMEM (1, TA, H) f32, this block's projections
    """
    b = pl.program_id(0)
    W, H = canvas_t_ref.shape
    n_strips = H // ty
    m0 = ty * W                                       # flattened (y, x) per strip

    cx = jnp.float32(W / 2.0)
    cy = jnp.float32(H / 2.0)
    inv_res = jnp.float32(1.0 / H)                    # '/IMAGE_RESOLUTION' (square image)

    # ---- angle/strip-invariant scaffolding, hoisted, all 2-D & lane-dense ----
    m_i = lax.broadcasted_iota(jnp.int32, (1, m0), 1)            # flat m = y*W + x, on lanes
    y_i = m_i // W
    x_i = m_i - y_i * W
    dx_row = x_i.astype(jnp.float32) - cx                         # (1, m0)
    y_row = y_i.astype(jnp.float32)                               # (1, m0), y within strip

    p_col = lax.broadcasted_iota(jnp.int32, (H, 1), 0).astype(jnp.float32)   # src rows
    q_col = lax.broadcasted_iota(jnp.int32, (W, 1), 0).astype(jnp.float32)   # src cols

    # segmented-sum matrix: seg[m, y] = 1 iff m // W == y   -> (m0, ty)
    seg = (lax.broadcasted_iota(jnp.int32, (m0, 1), 0) // W ==
           lax.broadcasted_iota(jnp.int32, (1, ty), 1)).astype(jnp.float32)

    canvas_t = canvas_t_ref[...]                                  # (W, H) bf16, stationary

    rows = []
    for a in range(ta):                                           # static unroll over angles
        cos_t = trig_ref[0, b * ta + a]
        sin_t = trig_ref[1, b * ta + a]

        strip_parts = []
        for s in range(n_strips):                                 # static unroll over strips
            dy_row = y_row + (jnp.float32(s * ty) - cy)           # (1, m0)

            # kornia warp_affine convention: dst(x,y) samples src at M(theta) @ (x,y,1),
            # M = get_rotation_matrix2d(center, theta) = [[c, s, ...], [-s, c, ...]].
            # TODO(synk): kornia/grid_sample half-pixel vs align_corners center convention
            #             ((W-1)/2 vs W/2) is not replicated bit-exactly.
            sx = cos_t * dx_row + sin_t * dy_row + cx             # (1, m0)
            sy = -sin_t * dx_row + cos_t * dy_row + cy            # (1, m0)

            # Bilinear hat weights in transposed layout (source index on sublanes,
            # flattened (y,x) on lanes).  Taps outside [0, H-1]/[0, W-1] vanish ->
            # zero-padding semantics of warp_affine.
            srow_t = jnp.maximum(0.0, 1.0 - jnp.abs(sy - p_col))  # (H, m0)
            scol_t = jnp.maximum(0.0, 1.0 - jnp.abs(sx - q_col))  # (W, m0)

            # Row interpolation on the MXU (bf16 in, f32 accumulate), lane-dense N = m0:
            #   tmpT[q, m] = sum_p canvasT[q, p] * srowT[p, m]
            tmp_t = jnp.dot(canvas_t, srow_t.astype(jnp.bfloat16),
                            preferred_element_type=jnp.float32)   # (W, m0) f32

            # Column interpolation + x-projection fused into one pass:
            #   colsum[m] = sum_q scolT[q, m] * tmpT[q, m]
            colsum = jnp.sum(tmp_t * scol_t, axis=0, keepdims=True)          # (1, m0)

            # Segmented sum over x within each output row y -> lane-dense (1, ty):
            strip_parts.append(jnp.dot(colsum, seg,
                                       preferred_element_type=jnp.float32))  # (1, ty)

        row = strip_parts[0] if n_strips == 1 else jnp.concatenate(strip_parts, axis=1)
        rows.append(row)                                          # (1, H)

    result = rows[0] if ta == 1 else jnp.concatenate(rows, axis=0)            # (ta, H)
    # ONE full-width, lane-dense store per grid step.
    out_ref[...] = (result * inv_res)[None, :, :]


# ------------------------------ tiling helpers --------------------------------------

def _pick_row_tile(h, bytes_per_row, budget):
    """Largest divisor of h (multiple of 8, or h itself) whose block fits `budget`."""
    if h * bytes_per_row <= budget:
        return h
    for d in range(h, 0, -1):
        if h % d == 0 and d % 8 == 0 and d * bytes_per_row <= budget:
            return d
    return h


def _pick_strip(h, w, budget):
    """Largest divisor ty of h with ~14*ty*w*h bytes of live strip temporaries <= budget."""
    per_row = 14 * w * h
    if h * per_row <= budget:
        return h
    for d in range(h, 0, -1):
        if h % d == 0 and d * per_row <= budget:
            return d
    return 1


# ---------------------------------- JAX wrapper -------------------------------------

def renderer_forward(sdf_vol, intensities, all_thetas_deg, offset=0.0):
    """sdf_vol: (C, H, W) f32; intensities: (C,) f32; all_thetas_deg: (T,) f32.

    Returns (H, T) float32, matching Renderer.forward's (IMAGE_RESOLUTION, num_thetas).
    """
    C, H, W = sdf_vol.shape
    T = int(all_thetas_deg.shape[0])

    # ---- angle batch per grid step: amortize per-step overhead, keep >= 2 steps for
    #      megacore whenever there are >= 2 angles ----
    ta = max(1, min(8, (T + 1) // 2)) if T >= 2 else 1
    nb = -(-T // ta)
    t_pad = nb * ta

    # ---- row-strip height for the warp, sized against a conservative VMEM budget ----
    ty = _pick_strip(H, W, 12 * 1024 * 1024)

    ang = jnp.deg2rad(all_thetas_deg.astype(jnp.float32) + jnp.float32(offset))
    trig = jnp.stack([jnp.cos(ang), jnp.sin(ang)], axis=0)                    # (2, T)
    if t_pad > T:
        trig = jnp.pad(trig, ((0, 0), (0, t_pad - T)), mode="edge")           # (2, Tpad)
    inty = intensities.astype(jnp.float32).reshape(C, 1, 1)

    # ---- pre-pass: angle-invariant canvas, strip-tiled over rows, bf16 for the MXU ----
    th = _pick_row_tile(H, C * W * 4, 8 * 1024 * 1024)
    canvas_bf16 = pl.pallas_call(
        _canvas_kernel,
        out_shape=jax.ShapeDtypeStruct((H, W), jnp.bfloat16),
        grid=(H // th,),
        in_specs=[
            pl.BlockSpec((C, th, W), lambda i: (0, i, 0)),
            pl.BlockSpec((C, 1, 1), lambda i: (0, 0, 0)),
        ],
        out_specs=pl.BlockSpec((th, W), lambda i: (i, 0)),
        compiler_params=pltpu.CompilerParams(dimension_semantics=("parallel",)),
    )(sdf_vol, inty)

    # Warp kernel consumes the canvas transposed (W, H); tiny XLA transpose between calls.
    canvas_t = canvas_bf16.T

    # ---- per-angle-block warp + projection ----
    out3 = pl.pallas_call(
        functools.partial(_warp_project_kernel, ta=ta, ty=ty),
        out_shape=jax.ShapeDtypeStruct((nb, ta, H), jnp.float32),
        grid_spec=pltpu.PrefetchScalarGridSpec(
            num_scalar_prefetch=1,
            grid=(nb,),
            in_specs=[pl.BlockSpec((W, H), lambda b, trig: (0, 0))],
            # Per-block output block -> the angle-block axis shards across megacore TCs.
            out_specs=pl.BlockSpec((1, ta, H), lambda b, trig: (b, 0, 0)),
        ),
        compiler_params=pltpu.CompilerParams(
            dimension_semantics=("parallel",),
            vmem_limit_bytes=32 * 1024 * 1024,
        ),
    )(trig, canvas_t)

    # Match the PyTorch (IMAGE_RESOLUTION, num_thetas) output convention.
    return out3.reshape(t_pad, H)[:T].T


# --------------------------- deterministic setup / main -----------------------------

if __name__ == "__main__":
    # Config-equivalent (small synthetic sizes)
    IMAGE_RESOLUTION = 32
    NUM_SDFS = 2
    THETA_MAX = 90.0
    INTENSITIES = np.array([0.3, 0.5], dtype=np.float64)   # config.INTENSITIES
    BANDWIDTH = 0.05
    OFFSET = 0.0

    # Intensities module, learnable=False:
    #   inty = 0 * INTENSITIES ; default = INTENSITIES
    #   forward() = default + clamp(inty, -1, 1) * bandwidth
    inty_param = 0.0 * INTENSITIES
    intensities = jnp.asarray(
        INTENSITIES + np.clip(inty_param, -1.0, 1.0) * BANDWIDTH, dtype=jnp.float32)

    # TODO(synk): SDF.forward is abstract (raises NotImplementedError) in the reference;
    #             use a fixed deterministic random SDF volume independent of theta.
    key = jax.random.PRNGKey(0)
    sdf_vol = jax.random.normal(
        key, (NUM_SDFS, IMAGE_RESOLUTION, IMAGE_RESOLUTION), dtype=jnp.float32)

    # 1D float array of angles within [-THETA_MAX, THETA_MAX]
    all_thetas = jnp.linspace(-45.0, 45.0, 8, dtype=jnp.float32)

    out = renderer_forward(sdf_vol, intensities, all_thetas, offset=OFFSET)
    out = jax.block_until_ready(out)

    assert out.shape == (IMAGE_RESOLUTION, all_thetas.shape[0])
    assert out.dtype == jnp.float32
    assert bool(jnp.all(jnp.isfinite(out)))
    print("KERNEL_OK")
</pallas_src>

<mosaic_0001>
module attributes {stable_mosaic.version = 11 : i64} {
  func.func @_canvas_kernel(%arg0: i32, %arg1: memref<2x32x32xf32, #tpu.memory_space<vmem>>, %arg2: memref<2x1x1xf32, #tpu.memory_space<vmem>>, %arg3: memref<32x32xbf16, #tpu.memory_space<vmem>>) attributes {dimension_semantics = [#tpu.dimension_semantics<parallel>], iteration_bounds = array<i64: 1>, scalar_prefetch = 0 : i64, scratch_operands = 0 : i64, tpu.core_type = #tpu.core_type<tc>, window_params = [{transform_indices = @transform_0, window_bounds = array<i64: 2, 32, 32>}, {pipeline_mode = #tpu.pipeline_mode<synchronous>, transform_indices = @transform_1, window_bounds = array<i64: 2, 1, 1>}, {transform_indices = @transform_2, window_bounds = array<i64: 32, 32>}]} {
    %c0 = arith.constant 0 : index
    %c0_0 = arith.constant 0 : index
    %c0_1 = arith.constant 0 : index
    %0 = vector.load %arg1[%c0, %c0_0, %c0_1] : memref<2x32x32xf32, #tpu.memory_space<vmem>>, vector<2x32x32xf32>
    %cst = arith.constant 5.000000e-01 : f32
    %1 = vector.broadcast %cst : f32 to vector<2x32x32xf32>
    %2 = arith.mulf %1, %0 : vector<2x32x32xf32>
    %3 = math.tanh %2 : vector<2x32x32xf32>
    %cst_2 = arith.constant 2.500000e+01 : f32
    %4 = vector.broadcast %cst_2 : f32 to vector<2x32x32xf32>
    %5 = arith.mulf %4, %3 : vector<2x32x32xf32>
    %cst_3 = arith.constant 0.000000e+00 : f32
    %cst_4 = arith.constant 1.000000e+00 : f32
    %6 = vector.broadcast %cst_3 : f32 to vector<2x32x32xf32>
    %7 = arith.maximumf %6, %5 : vector<2x32x32xf32>
    %8 = vector.broadcast %cst_4 : f32 to vector<2x32x32xf32>
    %9 = arith.minimumf %8, %7 : vector<2x32x32xf32>
    %c0_5 = arith.constant 0 : index
    %c0_6 = arith.constant 0 : index
    %c0_7 = arith.constant 0 : index
    %10 = vector.load %arg2[%c0_5, %c0_6, %c0_7] : memref<2x1x1xf32, #tpu.memory_space<vmem>>, vector<2x1x1xf32>
    %11 = vector.broadcast %10 : vector<2x1x1xf32> to vector<2x32x32xf32>
    %12 = arith.mulf %9, %11 : vector<2x32x32xf32>
    %cst_8 = arith.constant dense<0.000000e+00> : vector<32x32xf32>
    %13 = vector.multi_reduction <add>, %12, %cst_8 [0] : vector<2x32x32xf32> to vector<32x32xf32>
    %14 = arith.truncf %13 : vector<32x32xf32> to vector<32x32xbf16>
    %c0_9 = arith.constant 0 : index
    %c0_10 = arith.constant 0 : index
    %15 = vector.load %arg3[%c0_9, %c0_10] : memref<32x32xbf16, #tpu.memory_space<vmem>>, vector<32x32xbf16>
    tpu.vector_store %arg3[%c0_9, %c0_10], %14 {strides = array<i32>} : memref<32x32xbf16, #tpu.memory_space<vmem>>, vector<32x32xbf16>,
    return
  }
  func.func @transform_0(%arg0: i32) -> (i32, i32, i32) {
    %c0_i32 = arith.constant 0 : i32
    %c0_i32_0 = arith.constant 0 : i32
    %c0_i32_1 = arith.constant 0 : i32
    return %c0_i32, %arg0, %c0_i32_0 : i32, i32, i32
  }
  func.func @transform_1(%arg0: i32) -> (i32, i32, i32) {
    %c0_i32 = arith.constant 0 : i32
    %c0_i32_0 = arith.constant 0 : i32
    %c0_i32_1 = arith.constant 0 : i32
    %c0_i32_2 = arith.constant 0 : i32
    return %c0_i32, %c0_i32_0, %c0_i32_1 : i32, i32, i32
  }
  func.func @transform_2(%arg0: i32) -> (i32, i32) {
    %c0_i32 = arith.constant 0 : i32
    %c0_i32_0 = arith.constant 0 : i32
    return %arg0, %c0_i32 : i32, i32
  }
}

</mosaic_0001>

<bundles_post_ra>
// kernel: tpu_custom_call.1
= control target key start
LH: loop header
LB: loop body
LE: loop exit
PB: predicated region body
PF: predicated region fallthrough
CT: control target
= control target key end

     0   :  { %7 = vsyncpa [#allocation3], 0  ;;  %s287_s0 = inlined_call_operand.hbm [shape: f32[2,32,32], index: 0, kind: input, shape index: {}]   ;;  %s288_s1 = inlined_call_operand.vmem [shape: f32[2,1,1], index: 1, kind: input, shape index: {}]   ;;  %s289_s2 = inlined_call_operand.hbm [shape: bf16[32,32], index: 2, kind: output, shape index: {}]  }
   0x1   :  { %8 = vsyncpa [#allocation4], 0  ;;  %s235_s9 = smov [#allocation2]   ;;  %s187_s13 = scalar_lea.hbm %s287_s0, 1024 }
   0x2   :  { %s14_s10 = sshll.u32 %s235_s9, 4  ;;  %p188_p0 = scmp.ne.s32.totalorder %s287_s0, %s187_s13  ;;  %s15_s10 = int_to_ptr.vmem [resolvable:$true] %s14_s10 }
   0x3   :  { %p191_p1 = scmp.lt.u32.totalorder %s187_s13, %s287_s0 }
   0x5   :  { %p193_p2 = pnand %p191_p1, %p188_p0 }
   0x7   :  { %196 = shalt.err (!%p193_p2)
}
   0x8   :  { %s197_s18 = scalar_lea.vmem %s15_s10, 1024  ;;  %p202_p4 = scmp.lt.s32.totalorder %s15_s10, %s15_s10 }
   0x9   :  { %p198_p3 = scmp.ne.s32.totalorder %s15_s10, %s197_s18  ;;  %p203_p5 = scmp.lt.s32.totalorder %s197_s18, %s197_s18 }
   0xb   :  { %p204_p6 = por %p203_p5, %p202_p4 }
   0xd   :  { %p205_p7 = pnand %p204_p6, %p198_p3 }
   0xf   :  { %208 = shalt.err (!%p205_p7)
}
  0x10   :  { %s236_s19 = smov 128   ;;  %s237_s20 = smov 8  }
  0x11   :  { %20 = dma.hbm_to_vmem [thread:$0]  %s287_s0, 1024, %s15_s10, [#allocation3], %s236_s19, %s236_s19, %s237_s20  }
  0x12   :  { %231 = dma.done.wait [#allocation3], 1024  }
  0x13   :  { %232 = vsyncadd [#allocation3], 4294966272  ;;  %v238_v0 = vmov 0   ;;  %v153_v1 = vld [vmem:[%s288_s1] ss:$0 sm:$0xff]  ;;  %v27_v4 = vld [vmem:[#allocation2 + $0x8] sm:$0xff] }
  0x14   :  { %170 = vset.pattern.permute.xlu0 %v238_v0  ;;  %v154_v2 = vld [vmem:[%s288_s1 + $0x1] ss:$0 sm:$0xff]  ;;  %v28_v5 = vld [vmem:[#allocation2 + $0x10] sm:$0xff]  ;;  %v29_v6 = vld [vmem:[#allocation2 + $0x18] sm:$0xff]  ;;  %v35_v8 = vmul.f32 0.5, %v27_v4  ;;  %vm102_vm0 = vcmask 261120  }
  0x15   :  { %87 = vperm.xlu0 %170, %v153_v1   ;;  %v26_v3 = vld [vmem:[#allocation2] sm:$0xff]  ;;  %v36_v10 = vmul.f32 0.5, %v28_v5  ;;  %v31_v11 = vld [vmem:[#allocation2 + $0x28] sm:$0xff]  ;;  %v37_v12 = vmul.f32 0.5, %v29_v6  ;;  %v32_v13 = vld [vmem:[#allocation2 + $0x30] sm:$0xff]  ;;  %s239_s0 = smov [#allocation5]  }
  0x16   :  { %v34_v7 = vmul.f32 0.5, %v26_v3  ;;  %v30_v9 = vld [vmem:[#allocation2 + $0x20] sm:$0xff]  ;;  %v33_v14 = vld [vmem:[#allocation2 + $0x38] sm:$0xff]  ;;  %v39_v16 = vmul.f32 0.5, %v31_v11  ;;  %v40_v17 = vmul.f32 0.5, %v32_v13  ;;  %s141_s1 = sshll.u32 %s239_s0, 4  ;;  %s142_s1 = int_to_ptr.vmem [resolvable:$true] %s141_s1 }
  0x17   :  { %v38_v15 = vmul.f32 0.5, %v30_v9  ;;  %v41_v18 = vmul.f32 0.5, %v33_v14  ;;  %vm131_vm1 = vcmask 257024   ;;  %s209_s27 = scalar_lea.vmem %s142_s1, 256  ;;  %p214_p9 = scmp.lt.s32.totalorder %s142_s1, %s142_s1 }
  0x18   :  { %171 = vtanh.f32 %v34_v7  ;;  %p210_p8 = scmp.ne.s32.totalorder %s142_s1, %s209_s27  ;;  %p215_p10 = scmp.lt.s32.totalorder %s209_s27, %s209_s27 }
  0x19   :  { %91 = vperm.xlu0 %170, %v154_v2   ;;  %173 = vtanh.f32 %v35_v8 }
  0x1a   :  { %175 = vtanh.f32 %v36_v10  ;;  %p216_p11 = por %p215_p10, %p214_p9 }
  0x1b   :  { %177 = vtanh.f32 %v37_v12 }
  0x1c   :  { %179 = vtanh.f32 %v38_v15  ;;  %p217_p12 = pnand %p216_p11, %p210_p8 }
  0x1d   :  { %181 = vtanh.f32 %v39_v16 }
  0x1e   :  { %183 = vtanh.f32 %v40_v17 }
  0x1f   :  { %185 = vtanh.f32 %v41_v18 }
  0x22   :  { %v172_v19 = vpop.eup %171 }
  0x23   :  { %v174_v20 = vpop.eup %173  ;;  %v50_v27 = vmul.f32 25.0, %v172_v19 }
  0x24   :  { %v176_v21 = vpop.eup %175  ;;  %v51_v28 = vmul.f32 25.0, %v174_v20 }
  0x25   :  { %v178_v22 = vpop.eup %177  ;;  %v52_v29 = vmul.f32 25.0, %v176_v21  ;;  %v58_v35 = vmax.f32 %v50_v27, 0.0 }
  0x26   :  { %v180_v23 = vpop.eup %179  ;;  %v53_v30 = vmul.f32 25.0, %v178_v22  ;;  %v59_v36 = vmax.f32 %v51_v28, 0.0 }
  0x27   :  { %v182_v24 = vpop.eup %181  ;;  %v54_v31 = vmul.f32 25.0, %v180_v23  ;;  %v60_v37 = vmax.f32 %v52_v29, 0.0  ;;  %v66_v43 = vmin.f32 %v58_v35, 1.0 }
  0x28   :  { %v184_v25 = vpop.eup %183  ;;  %v55_v32 = vmul.f32 25.0, %v182_v24  ;;  %v61_v38 = vmax.f32 %v53_v30, 0.0  ;;  %v67_v44 = vmin.f32 %v59_v36, 1.0 }
  0x29   :  { %v186_v26 = vpop.eup %185  ;;  %v56_v33 = vmul.f32 25.0, %v184_v25  ;;  %v62_v39 = vmax.f32 %v54_v31, 0.0  ;;  %v68_v45 = vmin.f32 %v60_v37, 1.0 }
  0x2a   :  { %v57_v34 = vmul.f32 25.0, %v186_v26  ;;  %v63_v40 = vmax.f32 %v55_v32, 0.0  ;;  %v69_v46 = vmin.f32 %v61_v38, 1.0 }
  0x2b   :  { %v64_v41 = vmax.f32 %v56_v33, 0.0  ;;  %v70_v48 = vmin.f32 %v62_v39, 1.0 }
  0x2c   :  { %v65_v42 = vmax.f32 %v57_v34, 0.0  ;;  %v71_v49 = vmin.f32 %v63_v40, 1.0 }
  0x2d   :  { %v72_v50 = vmin.f32 %v64_v41, 1.0 }
  0x2e   :  { %v73_v51 = vmin.f32 %v65_v42, 1.0 }
  0x94   :  { %v88_v47 = vpop.permute.xlu0 %87 }
  0x95   :  { %v94_v52 = vmul.f32 %v88_v47, %v66_v43  ;;  %v95_v53 = vmul.f32 %v88_v47, %v67_v44  ;;  %v96_v54 = vmul.f32 %v88_v47, %v68_v45  ;;  %v97_v55 = vmul.f32 %v88_v47, %v69_v46 }
  0x97   :  { %v103_v61 = vsel %vm102_vm0, %v94_v52, 0.0  ;;  %v106_v62 = vsel %vm102_vm0, %v95_v53, 0.0  ;;  %v109_v63 = vsel %vm102_vm0, %v96_v54, 0.0  ;;  %v112_v0 = vsel %vm102_vm0, %v97_v55, 0.0 }
  0x98   :  { %v92_v56 = vpop.permute.xlu0 %91 }
  0x99   :  { %v98_v57 = vmul.f32 %v92_v56, %v70_v48  ;;  %v99_v58 = vmul.f32 %v92_v56, %v71_v49  ;;  %v100_v59 = vmul.f32 %v92_v56, %v72_v50  ;;  %v101_v60 = vmul.f32 %v92_v56, %v73_v51 }
  0x9b   :  { %v104_v1 = vsel %vm102_vm0, %v98_v57, 0.0  ;;  %v107_v2 = vsel %vm102_vm0, %v99_v58, 0.0  ;;  %v110_v3 = vsel %vm102_vm0, %v100_v59, 0.0  ;;  %v113_v4 = vsel %vm102_vm0, %v101_v60, 0.0 }
  0x9c   :  { %v105_v5 = vadd.f32 %v104_v1, %v103_v61  ;;  %v108_v6 = vadd.f32 %v107_v2, %v106_v62  ;;  %v111_v7 = vadd.f32 %v110_v3, %v109_v63  ;;  %v114_v8 = vadd.f32 %v113_v4, %v112_v0 }
  0x9e   :  { %v159_v9 = vpack.c.bf16 %v105_v5, %v105_v5  ;;  %v160_v10 = vpack.c.bf16 %v108_v6, %v108_v6  ;;  %v161_v11 = vpack.c.bf16 %v111_v7, %v111_v7  ;;  %v162_v12 = vpack.c.bf16 %v114_v8, %v114_v8 }
  0xa0   :  { %132 = vst.msk [vmem:[#allocation5] sm:$0xf] %vm131_vm1, %v159_v9  ;;  %133 = vst.msk [vmem:[#allocation5 + $0x4] sm:$0xf] %vm131_vm1, %v160_v10 }
  0xa1   :  { %134 = vst.msk [vmem:[#allocation5 + $0x8] sm:$0xf] %vm131_vm1, %v161_v11  ;;  %135 = vst.msk [vmem:[#allocation5 + $0xc] sm:$0xf] %vm131_vm1, %v162_v12 }
  0xa2   :  { %220 = shalt.err (!%p217_p12)
}
  0xa3   :  { %s221_s30 = scalar_lea.hbm %s289_s2, 256 }
  0xa4   :  { %p222_p13 = scmp.ne.s32.totalorder %s289_s2, %s221_s30  ;;  %p225_p0 = scmp.lt.u32.totalorder %s221_s30, %s289_s2 }
  0xa6   :  { %p227_p1 = pnand %p225_p0, %p222_p13 }
  0xa8   :  { %230 = shalt.err (!%p227_p1)
}
  0xa9   :  { %s240_s7 = smov 64   ;;  %s241_s8 = smov 4  }
  0xaa   :  { %147 = dma.vmem_to_hbm [thread:$0]  %s142_s1, 256, %s289_s2, [#allocation4], %s240_s7, %s240_s7, %s241_s8  }
  0xab   :  { %233 = dma.done.wait [#allocation4], 256  }
  0xac   :  { %234 = vsyncadd [#allocation4], 4294967040 }
  0xad   :  { %151 = vsyncpa [#allocation3], 1 }
  0xae   :  { %152 = vsyncpa [#allocation4], 1 }

</bundles_post_ra>
